<compile_context>
chip_gen: v7x
topology: tpu7x:2x2x1
jax: 0.10.0
libtpu: 0.0.40
codegen_flags: <defaults>
</compile_context>

<pallas_src>
import functools

import jax
import jax.numpy as jnp
from jax import lax
from jax.experimental import pallas as pl
from jax.experimental.pallas import tpu as pltpu

FEATURE_DIM = 2048   # matches self.feature_dim = 2048 in the PyTorch module
STEM_CH = 128        # lane-dense stem width (multiple of 128)
K_PAD = 32           # 9*C_in (=27 for RGB) zero-padded to 32, NOT 128


def _round_up(x: int, m: int) -> int:
    return (x + m - 1) // m * m


def _stem_pool_kernel(patches_ref, w1_ref, b1_ref, pooled_ref, acc_ref, *,
                      inv_hw, n_pad_rows, chunk):
    """Fused stem-conv (im2col matmul) + bias + ReLU -> pooled-sum accumulate
    -> (last spatial tile only) mean written to pooled output.

    Grid = (N, HW_tiles); HW is the reduction ("arbitrary") axis.
      patches_ref: (1, hw_tile, K_PAD)  bf16   im2col patch tile of image n
      w1_ref:      (K_PAD, STEM_CH)     bf16
      b1_ref:      (1, STEM_CH)         f32
      pooled_ref:  (1, 1, STEM_CH)      f32    pooled stem features (output)
      acc_ref:     (1, STEM_CH)         f32    running spatial sum (scratch)
    """
    hw = pl.program_id(1)

    @pl.when(hw == 0)
    def _init():
        acc_ref[...] = jnp.zeros_like(acc_ref)

    w1 = w1_ref[...]
    b1 = b1_ref[...]
    tile_ref = patches_ref.at[0]                    # (hw_tile, K_PAD) view
    n_chunks = tile_ref.shape[0] // chunk           # static

    def body(i, carry):
        start = pl.multiple_of(i * chunk, chunk)
        p = tile_ref[pl.ds(start, chunk), :]        # (chunk, K_PAD) bf16
        h = jnp.dot(p, w1, preferred_element_type=jnp.float32)
        h = jnp.maximum(h + b1, 0.0)                # bias pre-ReLU
        return carry + jnp.sum(h, axis=0, keepdims=True)

    partial = lax.fori_loop(0, n_chunks, body,
                            jnp.zeros((1, STEM_CH), jnp.float32),
                            unroll=True)
    acc_ref[...] += partial                         # running spatial sum

    @pl.when(hw == pl.num_programs(1) - 1)
    def _finalize():
        # Zero-padded spatial rows each contributed relu(0 + b1); remove them.
        pad_fix = n_pad_rows * jnp.maximum(b1, 0.0)
        pooled = (acc_ref[...] - pad_fix) * inv_hw  # (1, STEM_CH)
        pooled_ref[...] = pooled[None]


def _im2col_3x3_same(x_nhwc):
    """Extract 3x3 patches with 'same' zero padding. Returns (N, H*W, 9*C)."""
    N, H, W, C = x_nhwc.shape
    xp = jnp.pad(x_nhwc, ((0, 0), (1, 1), (1, 1), (0, 0)))
    cols = []
    for dy in range(3):
        for dx in range(3):
            cols.append(xp[:, dy:dy + H, dx:dx + W, :])
    patches = jnp.concatenate(cols, axis=-1)        # (N, H, W, 9C)
    return patches.reshape(N, H * W, 9 * C)


def init_params(c_in: int, key=None):
    """Deterministic synthetic parameters (no checkpoint loading)."""
    if key is None:
        key = jax.random.PRNGKey(0)
    k1, k2, k3, k4 = jax.random.split(key, 4)
    kdim = 9 * c_in
    if kdim > K_PAD:
        raise ValueError(f"9*c_in={kdim} exceeds K_PAD={K_PAD}")
    w1_core = (jax.random.normal(k1, (kdim, STEM_CH), jnp.float32)
               / jnp.sqrt(jnp.float32(kdim)))
    # Rows beyond 9*c_in stay zero so lane padding of the patches is a no-op.
    w1 = jnp.zeros((K_PAD, STEM_CH), jnp.float32).at[:kdim].set(w1_core)
    b1 = 0.01 * jax.random.normal(k2, (1, STEM_CH), jnp.float32)
    w2 = (jax.random.normal(k3, (STEM_CH, FEATURE_DIM), jnp.float32)
          / jnp.sqrt(jnp.float32(STEM_CH)))
    b2 = 0.01 * jax.random.normal(k4, (1, FEATURE_DIM), jnp.float32)
    return {'w1': w1, 'b1': b1, 'w2': w2, 'b2': b2}


@functools.partial(jax.jit, static_argnames=("hw_tile",))
def inception_v3_features(x_nchw, params, *, hw_tile=8192):
    """Forward pass: x [N, C, H, W] (NCHW, like PyTorch) -> [N, 2048]."""
    x = jnp.asarray(x_nchw, jnp.float32)
    N, C, H, W = x.shape
    HW = H * W
    K = 9 * C
    if K > K_PAD:
        raise ValueError(f"9*C={K} exceeds K_PAD={K_PAD}")

    x_nhwc = jnp.transpose(x, (0, 2, 3, 1))                      # NCHW -> NHWC
    patches = _im2col_3x3_same(x_nhwc)                           # (N, HW, 9C)

    # Spatial tile: multiple of 8 sublanes, clamped to the padded extent.
    hw_tile = _round_up(min(int(hw_tile), _round_up(HW, 8)), 8)
    HW_pad = _round_up(HW, hw_tile)
    n_hw_tiles = HW_pad // hw_tile
    n_pad_rows = HW_pad - HW
    # Sub-chunk so the f32 `h` intermediate stays a few vregs (v5e store slot).
    chunk = 512 if hw_tile % 512 == 0 else hw_tile

    # Lane-pad K -> 32 only, pad HW to a tile multiple, bf16 streamed operand.
    patches = jnp.pad(patches, ((0, 0), (0, n_pad_rows), (0, K_PAD - K)))
    patches = patches.astype(jnp.bfloat16)
    w1 = params['w1'].astype(jnp.bfloat16)                       # (32, 128)
    b1 = params['b1'].astype(jnp.float32)                        # (1, 128)

    kernel = functools.partial(_stem_pool_kernel,
                               inv_hw=1.0 / float(HW),
                               n_pad_rows=float(n_pad_rows),
                               chunk=chunk)

    flops = 2 * N * HW_pad * K_PAD * STEM_CH
    bytes_accessed = (patches.size * 2 + w1.size * 2 + b1.size * 4
                      + N * STEM_CH * 4)

    pooled3 = pl.pallas_call(
        kernel,
        out_shape=jax.ShapeDtypeStruct((N, 1, STEM_CH), jnp.float32),
        grid_spec=pltpu.PrefetchScalarGridSpec(
            num_scalar_prefetch=0,
            grid=(N, n_hw_tiles),
            in_specs=[
                pl.BlockSpec((1, hw_tile, K_PAD), lambda n, h: (n, h, 0)),
                pl.BlockSpec((K_PAD, STEM_CH), lambda n, h: (0, 0)),
                pl.BlockSpec((1, STEM_CH), lambda n, h: (0, 0)),
            ],
            out_specs=pl.BlockSpec((1, 1, STEM_CH), lambda n, h: (n, 0, 0)),
            scratch_shapes=[pltpu.VMEM((1, STEM_CH), jnp.float32)],
        ),
        compiler_params=pltpu.CompilerParams(
            dimension_semantics=("parallel", "arbitrary"),
            vmem_limit_bytes=32 * 1024 * 1024,
        ),
        cost_estimate=pl.CostEstimate(
            flops=int(flops),
            transcendentals=0,
            bytes_accessed=int(bytes_accessed)),
    )(patches, w1, b1)

    # FC hoisted out of the kernel: one well-shaped (N,128)x(128,2048) f32
    # matmul instead of an M=1 MXU pass per image inside the kernel.
    pooled = pooled3.reshape(N, STEM_CH)
    feats = jnp.dot(pooled, params['w2'],
                    precision=lax.Precision.HIGHEST) + params['b2']
    return feats


def _reference_features(x_nchw, params):
    """Pure-JAX reference (bf16-rounded stem operands, f32 math)."""
    x = jnp.asarray(x_nchw, jnp.float32)
    N, C, H, W = x.shape
    K = 9 * C
    x_nhwc = jnp.transpose(x, (0, 2, 3, 1))
    patches = _im2col_3x3_same(x_nhwc)                           # (N, HW, 9C)
    p = patches.astype(jnp.bfloat16).astype(jnp.float32)
    w1 = params['w1'][:K].astype(jnp.bfloat16).astype(jnp.float32)
    h = jnp.einsum('nmk,kc->nmc', p, w1, precision=lax.Precision.HIGHEST)
    h = jnp.maximum(h + params['b1'][None], 0.0)
    pooled = jnp.mean(h, axis=1)                                 # (N, STEM_CH)
    return jnp.dot(pooled, params['w2'],
                   precision=lax.Precision.HIGHEST) + params['b2']


if __name__ == "__main__":
    key = jax.random.PRNGKey(0)
    k_x, k_p = jax.random.split(key)

    # Small NCHW input consistent with the module's image-tensor contract.
    # H=W=17 makes HW=289 not a multiple of 8, exercising the padded-row
    # correction; the second call (hw_tile=128) exercises multi-tile
    # accumulation across the reduction axis.
    N, C, H, W = 2, 3, 17, 17
    x = jax.random.normal(k_x, (N, C, H, W), jnp.float32)

    params = init_params(C, key=k_p)
    ref = _reference_features(x, params)

    # 1) default (single spatial tile after clamping)
    feats = inception_v3_features(x, params)
    feats = jax.block_until_ready(feats)
    assert feats.shape == (N, FEATURE_DIM), feats.shape
    assert feats.dtype == jnp.float32
    assert bool(jnp.all(jnp.isfinite(feats)))
    err0 = float(jnp.max(jnp.abs(feats - ref)))
    assert bool(jnp.allclose(feats, ref, rtol=2e-2, atol=2e-2)), err0

    # 2) forced multi-tile reduction path
    feats_mt = inception_v3_features(x, params, hw_tile=128)     # 3 HW tiles
    feats_mt = jax.block_until_ready(feats_mt)
    err1 = float(jnp.max(jnp.abs(feats_mt - ref)))
    assert bool(jnp.allclose(feats_mt, ref, rtol=2e-2, atol=2e-2)), err1

    print("KERNEL_OK")
</pallas_src>

<mosaic_0001>
module attributes {stable_mosaic.version = 11 : i64} {
  func.func @_stem_pool_kernel(%arg0: i32, %arg1: i32, %arg2: memref<1x296x32xbf16, #tpu.memory_space<vmem>>, %arg3: memref<32x128xbf16, #tpu.memory_space<vmem>>, %arg4: memref<1x128xf32, #tpu.memory_space<vmem>>, %arg5: memref<1x1x128xf32, #tpu.memory_space<vmem>>, %arg6: memref<1x128xf32, #tpu.memory_space<vmem>>) attributes {dimension_semantics = [#tpu.dimension_semantics<parallel>, #tpu.dimension_semantics<arbitrary>], iteration_bounds = array<i64: 2, 1>, scalar_prefetch = 0 : i64, scratch_operands = 1 : i64, tpu.core_type = #tpu.core_type<tc>, window_params = [{transform_indices = @transform_0, window_bounds = array<i64: 1, 296, 32>}, {pipeline_mode = #tpu.pipeline_mode<synchronous>, transform_indices = @transform_1, window_bounds = array<i64: 32, 128>}, {pipeline_mode = #tpu.pipeline_mode<synchronous>, transform_indices = @transform_2, window_bounds = array<i64: 1, 128>}, {transform_indices = @transform_3, window_bounds = array<i64: 1, 1, 128>}]} {
    %c0_i32 = arith.constant 0 : i32
    %0 = arith.cmpi eq, %arg1, %c0_i32 : i32
    %1 = arith.extui %0 : i1 to i32
    %c0_i32_0 = arith.constant 0 : i32
    %2 = arith.cmpi ne, %1, %c0_i32_0 : i32
    scf.if %2 {
      %cst_18 = arith.constant 0.000000e+00 : f32
      %26 = vector.broadcast %cst_18 : f32 to vector<1x128xf32>
      %c0_19 = arith.constant 0 : index
      %c0_20 = arith.constant 0 : index
      %27 = vector.load %arg6[%c0_19, %c0_20] : memref<1x128xf32, #tpu.memory_space<vmem>>, vector<1x128xf32>
      tpu.vector_store %arg6[%c0_19, %c0_20], %26 {strides = array<i32>} : memref<1x128xf32, #tpu.memory_space<vmem>>, vector<1x128xf32>,
    } else {
    }
    %c0 = arith.constant 0 : index
    %c0_1 = arith.constant 0 : index
    %3 = vector.load %arg3[%c0, %c0_1] : memref<32x128xbf16, #tpu.memory_space<vmem>>, vector<32x128xbf16>
    %c0_2 = arith.constant 0 : index
    %c0_3 = arith.constant 0 : index
    %4 = vector.load %arg4[%c0_2, %c0_3] : memref<1x128xf32, #tpu.memory_space<vmem>>, vector<1x128xf32>
    %cst = arith.constant 0.000000e+00 : f32
    %5 = vector.broadcast %cst : f32 to vector<1x128xf32>
    %c0_i32_4 = arith.constant 0 : i32
    %c0_i32_5 = arith.constant 0 : i32
    %c296_i32 = arith.constant 296 : i32
    %6 = arith.muli %c0_i32_5, %c296_i32 : i32
    %7 = tpu.assume_multiple %6, 296 : i32
    %c0_i32_6 = arith.constant 0 : i32
    %c0_i32_7 = arith.constant 0 : i32
    %8 = tpu.memref_slice %arg2[%c0_i32_4, %c0_i32_6, %c0_i32_7] : memref<1x296x32xbf16, #tpu.memory_space<vmem>> -> memref<1x296x32xbf16, #tpu.memory_space<vmem>>
    %9 = tpu.memref_squeeze %8 : memref<1x296x32xbf16, #tpu.memory_space<vmem>> -> memref<296x32xbf16, #tpu.memory_space<vmem>>
    %10 = arith.index_cast %7 : i32 to index
    %c0_8 = arith.constant 0 : index
    %11 = vector.load %9[%10, %c0_8] : memref<296x32xbf16, #tpu.memory_space<vmem>>, vector<296x32xbf16>
    %cst_9 = arith.constant dense<0.000000e+00> : vector<296x128xf32>
    %12 = tpu.matmul %11, %3, %cst_9 {dimension_numbers = #tpu.dot_dimension_numbers<[1], [0], [0], [1], [0, 0, 1, 1], [], []>} : vector<296x32xbf16>, vector<32x128xbf16>, vector<296x128xf32> -> vector<296x128xf32>
    %13 = vector.broadcast %4 : vector<1x128xf32> to vector<296x128xf32>
    %14 = arith.addf %12, %13 : vector<296x128xf32>
    %cst_10 = arith.constant 0.000000e+00 : f32
    %15 = vector.broadcast %cst_10 : f32 to vector<296x128xf32>
    %16 = arith.maximumf %14, %15 : vector<296x128xf32>
    %cst_11 = arith.constant dense<0.000000e+00> : vector<128xf32>
    %17 = vector.multi_reduction <add>, %16, %cst_11 [0] : vector<296x128xf32> to vector<128xf32>
    %18 = vector.shape_cast %17 : vector<128xf32> to vector<1x128xf32>
    %19 = arith.addf %5, %18 : vector<1x128xf32>
    %c1_i32 = arith.constant 1 : i32
    %c0_12 = arith.constant 0 : index
    %c0_13 = arith.constant 0 : index
    %20 = vector.load %arg6[%c0_12, %c0_13] : memref<1x128xf32, #tpu.memory_space<vmem>>, vector<1x128xf32>
    %21 = arith.addf %20, %19 : vector<1x128xf32>
    %c0_14 = arith.constant 0 : index
    %c0_15 = arith.constant 0 : index
    %22 = vector.load %arg6[%c0_14, %c0_15] : memref<1x128xf32, #tpu.memory_space<vmem>>, vector<1x128xf32>
    tpu.vector_store %arg6[%c0_14, %c0_15], %21 {strides = array<i32>} : memref<1x128xf32, #tpu.memory_space<vmem>>, vector<1x128xf32>,
    %c0_i32_16 = arith.constant 0 : i32
    %23 = arith.cmpi eq, %arg1, %c0_i32_16 : i32
    %24 = arith.extui %23 : i1 to i32
    %c0_i32_17 = arith.constant 0 : i32
    %25 = arith.cmpi ne, %24, %c0_i32_17 : i32
    scf.if %25 {
      %cst_18 = arith.constant 0.000000e+00 : f32
      %26 = vector.broadcast %cst_18 : f32 to vector<1x128xf32>
      %27 = arith.maximumf %4, %26 : vector<1x128xf32>
      %cst_19 = arith.constant 7.000000e+00 : f32
      %28 = vector.broadcast %cst_19 : f32 to vector<1x128xf32>
      %29 = arith.mulf %28, %27 : vector<1x128xf32>
      %c0_20 = arith.constant 0 : index
      %c0_21 = arith.constant 0 : index
      %30 = vector.load %arg6[%c0_20, %c0_21] : memref<1x128xf32, #tpu.memory_space<vmem>>, vector<1x128xf32>
      %31 = arith.subf %30, %29 : vector<1x128xf32>
      %cst_22 = arith.constant 0.00346020772 : f32
      %32 = vector.broadcast %cst_22 : f32 to vector<1x128xf32>
      %33 = arith.mulf %31, %32 : vector<1x128xf32>
      %34 = vector.shape_cast %33 : vector<1x128xf32> to vector<1x1x128xf32>
      %c0_23 = arith.constant 0 : index
      %c0_24 = arith.constant 0 : index
      %c0_25 = arith.constant 0 : index
      %35 = vector.load %arg5[%c0_23, %c0_24, %c0_25] : memref<1x1x128xf32, #tpu.memory_space<vmem>>, vector<1x1x128xf32>
      tpu.vector_store %arg5[%c0_23, %c0_24, %c0_25], %34 {strides = array<i32>} : memref<1x1x128xf32, #tpu.memory_space<vmem>>, vector<1x1x128xf32>,
    } else {
    }
    return
  }
  func.func @transform_0(%arg0: i32, %arg1: i32) -> (i32, i32, i32) {
    %c0_i32 = arith.constant 0 : i32
    %c0_i32_0 = arith.constant 0 : i32
    return %arg0, %arg1, %c0_i32 : i32, i32, i32
  }
  func.func @transform_1(%arg0: i32, %arg1: i32) -> (i32, i32) {
    %c0_i32 = arith.constant 0 : i32
    %c0_i32_0 = arith.constant 0 : i32
    %c0_i32_1 = arith.constant 0 : i32
    return %c0_i32, %c0_i32_0 : i32, i32
  }
  func.func @transform_2(%arg0: i32, %arg1: i32) -> (i32, i32) {
    %c0_i32 = arith.constant 0 : i32
    %c0_i32_0 = arith.constant 0 : i32
    %c0_i32_1 = arith.constant 0 : i32
    return %c0_i32, %c0_i32_0 : i32, i32
  }
  func.func @transform_3(%arg0: i32, %arg1: i32) -> (i32, i32, i32) {
    %c0_i32 = arith.constant 0 : i32
    %c0_i32_0 = arith.constant 0 : i32
    %c0_i32_1 = arith.constant 0 : i32
    return %arg0, %c0_i32, %c0_i32_0 : i32, i32, i32
  }
}

</mosaic_0001>

<bundles_post_ra>
// kernel: inception_v3_features.1
= control target key start
LH: loop header
LB: loop body
LE: loop exit
PB: predicated region body
PF: predicated region fallthrough
CT: control target
= control target key end

     0   :  { %s996_s12 = smov 0   ;;  %s998_s13 = smov 0   ;;  %s1216_s0 = inlined_call_operand.vmem [shape: bf16[2,296,32], index: 0, kind: input, shape index: {}]   ;;  %s1217_s1 = inlined_call_operand.vmem [shape: bf16[32,128], index: 1, kind: input, shape index: {}]   ;;  %s1218_s2 = inlined_call_operand.vmem [shape: f32[1,128], index: 2, kind: input, shape index: {}]   ;;  %s1219_s3 = inlined_call_operand.vmem [shape: f32[2,1,128], index: 3, kind: output, shape index: {}]  }
   0x1   :  { %s1000_s14 = smov 0  }
   0x2 LB: > { %s25_s15 = sadd.s32 1, %s968_s13  ;;  %p753_p0 = scmp.ge.s32.totalorder %s972_s14, 1  ;;  %s972_s14 = sphi %s1000_s14, %s13_s14   ;;  %s968_s13 = sphi %s998_s13, %s1221_s13   ;;  %s964_s12 = sphi %s996_s12, %s1220_s12  }
   0x3   : > { %p27_p1 = scmp.ge.s32.totalorder %s25_s15, 2  ;;  %p156_p2 = scmp.lt.s32.totalorder %s972_s14, 3 }
   0x5   : > { %s1223_s15 = smov (%p27_p1, %s25_s15), 0  ;;  %p157_p3 = pnand %p753_p0, %p156_p2 }
   0x6   : > { %v929_v0 = vld [vmem:[%s1217_s1] sm:$0xff] (!%p157_p3)   ;;  %v974_v1 = vmov (!%p157_p3), 0.0   ;;  %v930_v2 = vld [vmem:[%s1217_s1 + $0x8] sm:$0xff] (!%p157_p3)   ;;  %vm975_vm0 = vmmov (!%p157_p3), 0   ;;  %p183_p4 = scmp.lt.s32.totalorder (!%p157_p3), %s964_s12, 1  ;;  %vm354_vm1 = vcmask (!%p157_p3), 261120   ;;  %v244_v22 = vlaneseq (!%p157_p3) }
   0x7   : > { %160 = sbr.rel (%p157_p3) target bundleno = 372 (0x174), region = 32  ;;  %818 = vmatprep.subr.bf16.mxu0 (!%p157_p3), %v974_v1  ;;  %200 = vst [vmem:[#allocation2] sm:$0x1] (!%p157_p3), %v974_v1  ;;  %898 = vmatprep.subr.bf16.mxu1 (!%p157_p3), %v974_v1  ;;  %v1112_v25 = vld [vmem:[%s1218_s2] sm:$0x1] (!%p157_p3) }
   0x8   : > { %819 = vmatpush3.bf16.msra.mxu0 (!%p157_p3), %v929_v0  ;;  %822 = vmatprep.mubr.msk.bf16.mxu0 (!%p157_p3), %vm975_vm0, %v974_v1  ;;  %v245_v23 = vshrl.u32 (!%p157_p3), %v244_v22, 7 }
   0x9   : > { %820 = vmatprep.subr.bf16.mxu0 (!%p157_p3), %v974_v1  ;;  %900 = vmatpush3.bf16.msra.mxu1 (!%p157_p3), %v929_v0 }
   0xa   : > { %899 = vmatprep.subr.bf16.mxu1 (!%p157_p3), %v974_v1  ;;  %862 = vmatprep.mubr.msk.bf16.mxu1 (!%p157_p3), %vm975_vm0, %v974_v1  ;;  %v246_v24 = vsub.s32 (!%p157_p3), 0, %v245_v23 }
   0xc   : > { %821 = vmatpush3.bf16.msra.mxu0 (!%p157_p3), %v930_v2  ;;  %v1115_v26 = vrot.slane (!%p157_p3), %v1112_v25, %v246_v24 }
   0xd   : > { %901 = vmatpush3.bf16.msra.mxu1 (!%p157_p3), %v930_v2 }
   0xe   : > { %s1225_s12 = smov (!%p183_p4, %s964_s12), 1 }
   0xf   : > { %s902_s20 = smul.u32 148, %s1225_s12  ;;  %s194_s28 = scalar_lea.vmem %s1219_s3, %s1225_s12 }
  0x11   : > { %s1035_s23 = scalar_lea.vmem %s1216_s0, %s902_s20 }
  0x12   : > { %v931_v3 = vld [vmem:[%s1035_s23] sm:$0xff]   ;;  %v932_v4 = vld [vmem:[%s1035_s23 + $0x8] sm:$0xff]   ;;  %v937_v5 = vld [vmem:[%s1035_s23 + $0x50] sm:$0xff]  }
  0x13   : > { %823 = vmatmul.mubr.msk.bf16.vlgmr.msra.gmra.mrb[0].mxu0 %vm354_vm1, %v931_v3  ;;  %863 = vmatmul.mubr.msk.bf16.vlgmr.msra.gmra.mrb[0].mxu1 %vm354_vm1, %v937_v5  ;;  %v939_v6 = vld [vmem:[%s1035_s23 + $0x58] sm:$0xff]   ;;  %v933_v7 = vld [vmem:[%s1035_s23 + $0x10] sm:$0xff]   ;;  %v941_v8 = vld [vmem:[%s1035_s23 + $0x60] sm:$0xff]  }
  0x14   : > { %826 = vmatprep.mubr.msk.bf16.mxu0 %vm975_vm0, %v974_v1  ;;  %866 = vmatprep.mubr.msk.bf16.mxu1 %vm975_vm0, %v974_v1  ;;  %v934_v9 = vld [vmem:[%s1035_s23 + $0x18] sm:$0xff]   ;;  %v943_v10 = vld [vmem:[%s1035_s23 + $0x68] sm:$0xff]   ;;  %v935_v11 = vld [vmem:[%s1035_s23 + $0x20] sm:$0xff]  }
  0x15   : > { %v945_v12 = vld [vmem:[%s1035_s23 + $0x70] sm:$0xff]   ;;  %v936_v13 = vld [vmem:[%s1035_s23 + $0x28] sm:$0xff]   ;;  %v946_v14 = vld [vmem:[%s1035_s23 + $0x78] sm:$0xff]  }
  0x16   : > { %v938_v15 = vld [vmem:[%s1035_s23 + $0x30] sm:$0xff]   ;;  %v947_v16 = vld [vmem:[%s1035_s23 + $0x80] sm:$0xff]   ;;  %v940_v17 = vld [vmem:[%s1035_s23 + $0x38] sm:$0xff]  }
  0x17   : > { %v948_v18 = vld [vmem:[%s1035_s23 + $0x88] sm:$0xff]   ;;  %v942_v19 = vld [vmem:[%s1035_s23 + $0x40] sm:$0xff]   ;;  %v949_v20 = vld [vmem:[%s1035_s23 + $0x90] ss:$0 sps:$4 sm:$0xff]  }
  0x18   : > { %v944_v21 = vld [vmem:[%s1035_s23 + $0x48] sm:$0xff]  }
  0x1b   : > { %827 = vmatmul.mubr.msk.bf16.gmra.mrb[4].mxu0 %vm354_vm1, %v932_v4  ;;  %867 = vmatmul.mubr.msk.bf16.gmra.mrb[4].mxu1 %vm354_vm1, %v939_v6 }
  0x1c   : > { %830 = vmatprep.mubr.msk.bf16.mxu0 %vm975_vm0, %v974_v1  ;;  %870 = vmatprep.mubr.msk.bf16.mxu1 %vm975_vm0, %v974_v1 }
  0x23   : > { %831 = vmatmul.mubr.msk.bf16.gmra.mrb[8].mxu0 %vm354_vm1, %v933_v7  ;;  %871 = vmatmul.mubr.msk.bf16.gmra.mrb[8].mxu1 %vm354_vm1, %v941_v8 }
  0x24   : > { %834 = vmatprep.mubr.msk.bf16.mxu0 %vm975_vm0, %v974_v1  ;;  %874 = vmatprep.mubr.msk.bf16.mxu1 %vm975_vm0, %v974_v1 }
  0x2b   : > { %835 = vmatmul.mubr.msk.bf16.gmra.mrb[12].mxu0 %vm354_vm1, %v934_v9  ;;  %875 = vmatmul.mubr.msk.bf16.gmra.mrb[12].mxu1 %vm354_vm1, %v943_v10 }
  0x2c   : > { %838 = vmatprep.mubr.msk.bf16.mxu0 %vm975_vm0, %v974_v1  ;;  %878 = vmatprep.mubr.msk.bf16.mxu1 %vm975_vm0, %v974_v1 }
  0x33   : > { %839 = vmatmul.mubr.msk.bf16.gmra.mrb[16].mxu0 %vm354_vm1, %v935_v11  ;;  %879 = vmatmul.mubr.msk.bf16.gmra.mrb[16].mxu1 %vm354_vm1, %v945_v12 }
  0x34   : > { %842 = vmatprep.mubr.msk.bf16.mxu0 %vm975_vm0, %v974_v1  ;;  %882 = vmatprep.mubr.msk.bf16.mxu1 %vm975_vm0, %v974_v1 }
  0x3b   : > { %843 = vmatmul.mubr.msk.bf16.gmra.mrb[20].mxu0 %vm354_vm1, %v936_v13  ;;  %883 = vmatmul.mubr.msk.bf16.gmra.mrb[20].mxu1 %vm354_vm1, %v946_v14 }
  0x3c   : > { %846 = vmatprep.mubr.msk.bf16.mxu0 %vm975_vm0, %v974_v1  ;;  %886 = vmatprep.mubr.msk.bf16.mxu1 %vm975_vm0, %v974_v1 }
  0x43   : > { %847 = vmatmul.mubr.msk.bf16.gmra.mrb[24].mxu0 %vm354_vm1, %v938_v15  ;;  %887 = vmatmul.mubr.msk.bf16.gmra.mrb[24].mxu1 %vm354_vm1, %v947_v16 }
  0x44   : > { %850 = vmatprep.mubr.msk.bf16.mxu0 %vm975_vm0, %v974_v1  ;;  %890 = vmatprep.mubr.msk.bf16.mxu1 %vm975_vm0, %v974_v1 }
  0x4b   : > { %851 = vmatmul.mubr.msk.bf16.gmra.mrb[28].mxu0 %vm354_vm1, %v940_v17  ;;  %891 = vmatmul.mubr.msk.bf16.gmra.mrb[28].mxu1 %vm354_vm1, %v948_v18 }
  0x4c   : > { %854 = vmatprep.mubr.msk.bf16.mxu0 %vm975_vm0, %v974_v1  ;;  %894 = vmatprep.mubr.msk.bf16.mxu1 %vm975_vm0, %v974_v1 }
  0x53   : > { %855 = vmatmul.mubr.msk.bf16.gmra.mrb[32].mxu0 %vm354_vm1, %v942_v19  ;;  %895 = vmatmul.mubr.msk.bf16.gmra.mrb[32].mxu1 %vm354_vm1, %v949_v20 }
  0x54   : > { %858 = vmatprep.mubr.msk.bf16.mxu0 %vm975_vm0, %v974_v1 }
  0x5b   : > { %859 = vmatmul.mubr.msk.bf16.gmra.mrb[36].mxu0 %vm354_vm1, %v944_v21 }
  0xe6   : > { %v446_v27 = vpop.f32.mrb[0].mxu0  ;;  %v1119_v35 = vpop.f32.mrb[0].mxu1 }
  0xe7   : > { %v447_v28 = vadd.f32 %v446_v27, %v1115_v26  ;;  %v824_v29 = vpop.f32.mrb[1].mxu0  ;;  %v864_v37 = vpop.f32.mrb[1].mxu1 }
  0xe8   : > { %v449_v30 = vpop.f32.mrb[2].mxu0  ;;  %v1121_v39 = vpop.f32.mrb[2].mxu1 }
  0xe9   : > { %v450_v31 = vadd.f32 %v449_v30, %v1115_v26  ;;  %v825_v32 = vpop.f32.mrb[3].mxu0  ;;  %v596_v33 = vmax.f32 %v447_v28, 0.0  ;;  %v865_v42 = vpop.f32.mrb[3].mxu1 }
  0xeb   : > { %v597_v34 = vmax.f32 %v450_v31, 0.0 }
  0xed   : > { %v633_v36 = vadd.f32 %v597_v34, %v596_v33 }
  0xee   : > { %v454_v38 = vpop.f32.mrb[4].mxu0  ;;  %v1125_v49 = vpop.f32.mrb[4].mxu1 }
  0xef   : > { %v455_v40 = vadd.f32 %v454_v38, %v1115_v26  ;;  %v828_v41 = vpop.f32.mrb[5].mxu0  ;;  %v868_v51 = vpop.f32.mrb[5].mxu1 }
  0xf0   : > { %v457_v43 = vpop.f32.mrb[6].mxu0  ;;  %v1127_v53 = vpop.f32.mrb[6].mxu1 }
  0xf1   : > { %v598_v44 = vmax.f32 %v455_v40, 0.0  ;;  %v458_v45 = vadd.f32 %v457_v43, %v1115_v26  ;;  %v829_v46 = vpop.f32.mrb[7].mxu0  ;;  %v869_v56 = vpop.f32.mrb[7].mxu1 }
  0xf3   : > { %v634_v47 = vadd.f32 %v633_v36, %v598_v44  ;;  %v599_v48 = vmax.f32 %v458_v45, 0.0 }
  0xf5   : > { %v635_v50 = vadd.f32 %v634_v47, %v599_v48 }
  0xf6   : > { %v462_v52 = vpop.f32.mrb[8].mxu0  ;;  %v1131_v63 = vpop.f32.mrb[8].mxu1 }
  0xf7   : > { %v463_v54 = vadd.f32 %v462_v52, %v1115_v26  ;;  %v832_v55 = vpop.f32.mrb[9].mxu0  ;;  %v872_v1 = vpop.f32.mrb[9].mxu1 }
  0xf8   : > { %v465_v57 = vpop.f32.mrb[10].mxu0  ;;  %v1133_v3 = vpop.f32.mrb[10].mxu1 }
  0xf9   : > { %v600_v58 = vmax.f32 %v463_v54, 0.0  ;;  %v466_v59 = vadd.f32 %v465_v57, %v1115_v26  ;;  %v833_v60 = vpop.f32.mrb[11].mxu0  ;;  %v873_v6 = vpop.f32.mrb[11].mxu1 }
  0xfb   : > { %v636_v61 = vadd.f32 %v635_v50, %v600_v58  ;;  %v601_v62 = vmax.f32 %v466_v59, 0.0 }
  0xfd   : > { %v637_v0 = vadd.f32 %v636_v61, %v601_v62 }
  0xfe   : > { %v470_v2 = vpop.f32.mrb[12].mxu0  ;;  %v1137_v13 = vpop.f32.mrb[12].mxu1 }
  0xff   : > { %v471_v4 = vadd.f32 %v470_v2, %v1115_v26  ;;  %v836_v5 = vpop.f32.mrb[13].mxu0  ;;  %v876_v15 = vpop.f32.mrb[13].mxu1 }
 0x100   : > { %v473_v7 = vpop.f32.mrb[14].mxu0  ;;  %v1139_v17 = vpop.f32.mrb[14].mxu1 }
 0x101   : > { %v602_v8 = vmax.f32 %v471_v4, 0.0  ;;  %v474_v9 = vadd.f32 %v473_v7, %v1115_v26  ;;  %v837_v10 = vpop.f32.mrb[15].mxu0  ;;  %v877_v20 = vpop.f32.mrb[15].mxu1 }
 0x103   : > { %v638_v11 = vadd.f32 %v637_v0, %v602_v8  ;;  %v603_v12 = vmax.f32 %v474_v9, 0.0 }
 0x105   : > { %v639_v14 = vadd.f32 %v638_v11, %v603_v12 }
 0x106   : > { %v478_v16 = vpop.f32.mrb[16].mxu0  ;;  %v1143_v29 = vpop.f32.mrb[16].mxu1 }
 0x107   : > { %v479_v18 = vadd.f32 %v478_v16, %v1115_v26  ;;  %v840_v19 = vpop.f32.mrb[17].mxu0  ;;  %v880_v31 = vpop.f32.mrb[17].mxu1 }
 0x108   : > { %v481_v21 = vpop.f32.mrb[18].mxu0  ;;  %v1145_v33 = vpop.f32.mrb[18].mxu1 }
 0x109   : > { %v604_v22 = vmax.f32 %v479_v18, 0.0  ;;  %v482_v23 = vadd.f32 %v481_v21, %v1115_v26  ;;  %v841_v24 = vpop.f32.mrb[19].mxu0  ;;  %v881_v37 = vpop.f32.mrb[19].mxu1 }
 0x10b   : > { %v640_v27 = vadd.f32 %v639_v14, %v604_v22  ;;  %v605_v28 = vmax.f32 %v482_v23, 0.0 }
 0x10d   : > { %v641_v30 = vadd.f32 %v640_v27, %v605_v28 }
 0x10e   : > { %v486_v32 = vpop.f32.mrb[20].mxu0  ;;  %v1149_v45 = vpop.f32.mrb[20].mxu1 }
 0x10f   : > { %v487_v34 = vadd.f32 %v486_v32, %v1115_v26  ;;  %v844_v36 = vpop.f32.mrb[21].mxu0  ;;  %v884_v47 = vpop.f32.mrb[21].mxu1 }
 0x110   : > { %v489_v38 = vpop.f32.mrb[22].mxu0  ;;  %v1151_v50 = vpop.f32.mrb[22].mxu1 }
 0x111   : > { %v606_v40 = vmax.f32 %v487_v34, 0.0  ;;  %v490_v41 = vadd.f32 %v489_v38, %v1115_v26  ;;  %v845_v42 = vpop.f32.mrb[23].mxu0  ;;  %v885_v54 = vpop.f32.mrb[23].mxu1 }
 0x113   : > { %v642_v43 = vadd.f32 %v641_v30, %v606_v40  ;;  %v607_v44 = vmax.f32 %v490_v41, 0.0 }
 0x115   : > { %v643_v46 = vadd.f32 %v642_v43, %v607_v44  ;;  %v527_v44 = vadd.f32 %v1119_v35, %v1115_v26 }
 0x116   : > { %v494_v48 = vpop.f32.mrb[24].mxu0  ;;  %v1155_v61 = vpop.f32.mrb[24].mxu1 }
 0x117   : > { %v495_v51 = vadd.f32 %v494_v48, %v1115_v26  ;;  %v848_v52 = vpop.f32.mrb[25].mxu0  ;;  %v888_v0 = vpop.f32.mrb[25].mxu1 }
 0x118   : > { %v497_v55 = vpop.f32.mrb[26].mxu0  ;;  %v1157_v2 = vpop.f32.mrb[26].mxu1 }
 0x119   : > { %v608_v56 = vmax.f32 %v495_v51, 0.0  ;;  %v498_v57 = vadd.f32 %v497_v55, %v1115_v26  ;;  %v849_v58 = vpop.f32.mrb[27].mxu0  ;;  %v889_v6 = vpop.f32.mrb[27].mxu1  ;;  %v530_v51 = vadd.f32 %v1121_v39, %v1115_v26  ;;  %v616_v55 = vmax.f32 %v527_v44, 0.0 }
 0x11a   : > { %v546_v39 = vadd.f32 %v1133_v3, %v1115_v26  ;;  %v562_v3 = vadd.f32 %v1145_v33, %v1115_v26  ;;  %v578_v33 = vadd.f32 %v1157_v2, %v1115_v26 }
 0x11b   : > { %v644_v59 = vadd.f32 %v643_v46, %v608_v56  ;;  %v609_v60 = vmax.f32 %v498_v57, 0.0  ;;  %v535_v56 = vadd.f32 %v1125_v49, %v1115_v26  ;;  %v617_v58 = vmax.f32 %v530_v51, 0.0 }
 0x11c   : > { %v551_v49 = vadd.f32 %v1137_v13, %v1115_v26  ;;  %v567_v13 = vadd.f32 %v1149_v45, %v1115_v26 }
 0x11d   : > { %v645_v62 = vadd.f32 %v644_v59, %v609_v60  ;;  %v538_v59 = vadd.f32 %v1127_v53, %v1115_v26  ;;  %v618_v35 = vmax.f32 %v535_v56, 0.0  ;;  %v554_v53 = vadd.f32 %v1139_v17, %v1115_v26 }
 0x11e   : > { %v502_v1 = vpop.f32.mrb[28].mxu0  ;;  %v1161_v14 = vpop.f32.mrb[28].mxu1  ;;  %v570_v17 = vadd.f32 %v1151_v50, %v1115_v26 }
 0x11f   : > { %v503_v4 = vadd.f32 %v502_v1, %v1115_v26  ;;  %v852_v5 = vpop.f32.mrb[29].mxu0  ;;  %v892_v16 = vpop.f32.mrb[29].mxu1  ;;  %v619_v1 = vmax.f32 %v538_v59, 0.0  ;;  %v583_v45 = vadd.f32 %v1161_v14, %v1115_v26 }
 0x120   : > { %v505_v7 = vpop.f32.mrb[30].mxu0  ;;  %v1163_v19 = vpop.f32.mrb[30].mxu1 }
 0x121   : > { %v610_v8 = vmax.f32 %v503_v4, 0.0  ;;  %v506_v9 = vadd.f32 %v505_v7, %v1115_v26  ;;  %v853_v10 = vpop.f32.mrb[31].mxu0  ;;  %v893_v22 = vpop.f32.mrb[31].mxu1  ;;  %v621_v7 = vmax.f32 %v546_v39, 0.0  ;;  %v586_v50 = vadd.f32 %v1163_v19, %v1115_v26 }
 0x122   : > { %v626_v22 = vmax.f32 %v567_v13, 0.0  ;;  %v682_v19 = vmax.f32 %v1112_v25, 0.0 }
 0x123   : > { %v646_v11 = vadd.f32 %v645_v62, %v610_v8  ;;  %v611_v12 = vmax.f32 %v506_v9, 0.0  ;;  %v543_v62 = vadd.f32 %v1131_v63, %v1115_v26  ;;  %v622_v9 = vmax.f32 %v551_v49, 0.0 }
 0x124   : > { %v559_v63 = vadd.f32 %v1143_v29, %v1115_v26  ;;  %v575_v29 = vadd.f32 %v1155_v61, %v1115_v26 }
 0x125   : > { %v647_v15 = vadd.f32 %v646_v11, %v611_v12  ;;  %v620_v5 = vmax.f32 %v543_v62, 0.0  ;;  %v623_v11 = vmax.f32 %v554_v53, 0.0 }
 0x126   : > { %v510_v18 = vpop.f32.mrb[32].mxu0  ;;  %v590_v32 = vpop.f32.mrb[32].mxu1 }
 0x127   : > { %v511_v20 = vadd.f32 %v510_v18, %v1115_v26  ;;  %v856_v21 = vpop.f32.mrb[33].mxu0  ;;  %v896_v36 = vpop.f32.mrb[33].mxu1  ;;  %v625_v18 = vmax.f32 %v562_v3, 0.0 }
 0x128   : > { %v513_v23 = vpop.f32.mrb[34].mxu0  ;;  %v593_v38 = vpop.f32.mrb[34].mxu1 }
 0x129   : > { %v612_v24 = vmax.f32 %v511_v20, 0.0  ;;  %v514_v27 = vadd.f32 %v513_v23, %v1115_v26  ;;  %v857_v28 = vpop.f32.mrb[35].mxu0  ;;  %v897_v42 = vpop.f32.mrb[35].mxu1  ;;  %v631_v38 = vmax.f32 %v586_v50, 0.0 }
 0x12a   : > { %v628_v28 = vmax.f32 %v575_v29, 0.0 }
 0x12b   : > { %v648_v30 = vadd.f32 %v647_v15, %v612_v24  ;;  %v613_v31 = vmax.f32 %v514_v27, 0.0  ;;  %v624_v15 = vmax.f32 %v559_v63, 0.0  ;;  %v627_v24 = vmax.f32 %v570_v17, 0.0 }
 0x12d   : > { %v649_v34 = vadd.f32 %v648_v30, %v613_v31  ;;  %v629_v31 = vmax.f32 %v578_v33, 0.0 }
 0x12e   : > { %v518_v37 = vpop.f32.mrb[36].mxu0 }
 0x12f   : > { %v519_v40 = vadd.f32 %v518_v37, %v1115_v26  ;;  %v860_v41 = vpop.f32.mrb[37].mxu0  ;;  %v630_v37 = vmax.f32 %v583_v45, 0.0 }
 0x130   : > { %v521_v43 = vpop.f32.mrb[38].mxu0 }
 0x131   : > { %v614_v46 = vmax.f32 %v519_v40, 0.0  ;;  %v522_v47 = vadd.f32 %v521_v43, %v1115_v26  ;;  %v861_v48 = vpop.f32.mrb[39].mxu0 }
 0x133   : > { %v650_v52 = vadd.f32 %v649_v34, %v614_v46  ;;  %v615_v54 = vmax.f32 %v522_v47, 0.0  ;;  %v591_v34 = vadd.f32 %v590_v32, %v1115_v26  ;;  %v676_v47 = vld [vmem:[#allocation2] sm:$0x1]  ;;  %v683_v26 = vmul.f32 7.0, %v682_v19 }
 0x135   : > { %v651_v57 = vadd.f32 %v650_v52, %v615_v54  ;;  %v632_v40 = vmax.f32 %v591_v34, 0.0 }
 0x137   : > { %v652_v60 = vadd.f32 %v651_v57, %v616_v55 }
 0x139   : > { %v653_v0 = vadd.f32 %v652_v60, %v617_v58 }
 0x13b   : > { %v654_v4 = vadd.f32 %v653_v0, %v618_v35 }
 0x13d   : > { %v655_v6 = vadd.f32 %v654_v4, %v619_v1 }
 0x13f   : > { %v656_v8 = vadd.f32 %v655_v6, %v620_v5 }
 0x141   : > { %v657_v10 = vadd.f32 %v656_v8, %v621_v7 }
 0x143   : > { %v658_v12 = vadd.f32 %v657_v10, %v622_v9 }
 0x145   : > { %v659_v16 = vadd.f32 %v658_v12, %v623_v11 }
 0x147   : > { %v660_v20 = vadd.f32 %v659_v16, %v624_v15 }
 0x149   : > { %v661_v21 = vadd.f32 %v660_v20, %v625_v18 }
 0x14b   : > { %v662_v23 = vadd.f32 %v661_v21, %v626_v22 }
 0x14d   : > { %v663_v27 = vadd.f32 %v662_v23, %v627_v24 }
 0x14f   : > { %v664_v30 = vadd.f32 %v663_v27, %v628_v28 }
 0x151   : > { %v665_v36 = vadd.f32 %v664_v30, %v629_v31 }
 0x153   : > { %v666_v61 = vadd.f32 %v665_v36, %v630_v37 }
 0x155   : > { %v667_v41 = vadd.f32 %v666_v61, %v631_v38 }
 0x157   : > { %v668_v2 = vadd.f32 %v667_v41, %v632_v40 }
 0x159   : > { %v669_v42 = vrot.slane %v668_v2, 4 }
 0x15b   : > { %v670_v43 = vadd.f32 %v669_v42, %v668_v2 }
 0x15d   : > { %v671_v44 = vrot.slane %v670_v43, 2 }
 0x15f   : > { %v672_v46 = vadd.f32 %v671_v44, %v670_v43 }
 0x161   : > { %v673_v14 = vrot.slane %v672_v46, 1 }
 0x163   : > { %v674_v48 = vadd.f32 %v673_v14, %v672_v46 }
 0x165   : > { %v677_v51 = vadd.f32 %v676_v47, %v674_v48 }
 0x167   : > { %678 = vst [vmem:[#allocation2] sm:$0x1] %v677_v51 }
 0x16e   : > { %v684_v32 = vld [vmem:[#allocation2] sm:$0x1] }
 0x16f   : > { %v685_v52 = vsub.f32 %v684_v32, %v683_v26 }
 0x171   : > { %v686_v54 = vmul.f32 0.0034602077, %v685_v52 }
 0x173   : > { %687 = vst [vmem:[%s194_s28] sm:$0x1] %v686_v54 }
 0x174 PF: > { %s13_s14 = sadd.s32 1, %s972_s14   ;;  %s1220_s12 = smov %s968_s13 }
 0x175   : > { %p10_p5 = scmp.ge.s32.totalorder %s13_s14, 4   ;;  %s1221_s13 = smov %s1223_s15 }
 0x177   :  { %12 = sbr.rel (!%p10_p5) target bundleno = 2 (0x2), region = 70 }

</bundles_post_ra>
